<compile_context>
chip_gen: v5e
topology: v5e:2x2
jax: 0.10.0
libtpu: 0.0.40
codegen_flags: <defaults>
</compile_context>

<pallas_src>
import functools

import jax
import jax.numpy as jnp
from jax.experimental import pallas as pl
from jax.experimental.pallas import tpu as pltpu

_SUBLANE = 8  # f32 sublane count


def _round_up(x, m):
    return (x + m - 1) // m * m


def _mlp_kernel(n_layers, x_ref, *refs):
    """Fused MLP forward on one batch tile.

    refs = (w0, b0, w1, b1, ..., w_{L-1}, b_{L-1}, out_ref)
    All arrays are at their natural feature widths; Mosaic pads sub-tile MXU
    operands in-register.  Matmuls accumulate in f32; bias add + tanh are
    f32 on the VPU/EUP.
    """
    out_ref = refs[-1]
    params = refs[:-1]

    h = x_ref[...]                                  # (tile_b, D_in) f32
    for i in range(n_layers):
        w = params[2 * i][...]                      # (D_in_i, D_out_i) f32
        b = params[2 * i + 1][...]                  # (1, D_out_i) f32
        h = jnp.dot(h, w, preferred_element_type=jnp.float32) + b
        if i != n_layers - 1:
            h = jnp.tanh(h)                         # EUP
    out_ref[...] = h.astype(out_ref.dtype)


def mlp_forward(x, weights, biases, *, tile_b=512):
    """Run the fused, batch-tiled MLP Pallas kernel.

    x:       (batch, layer[0]) float32
    weights: list of (layer[i], layer[i+1]) float32 (transposed vs PyTorch)
    biases:  list of (1, layer[i+1]) float32 (pre-packed once at init time)
    tile_b:  rows per grid step; weights/biases stay VMEM-resident across steps.
    """
    n_layers = len(weights)
    batch, in_dim = x.shape
    out_dim = weights[-1].shape[1]

    # Batch tiling: block sublane dim must be a multiple of 8; pad the batch
    # only up to a multiple of 8 (cheap, usually a no-op), never to a full
    # tile multiple — the grid uses cdiv and the partial last tile is masked.
    batch_p = _round_up(batch, _SUBLANE)
    tile_b = _round_up(min(tile_b, batch_p), _SUBLANE)
    grid = (pl.cdiv(batch_p, tile_b),)

    x_in = x
    if batch_p != batch:
        x_in = jnp.pad(x, ((0, batch_p - batch), (0, 0)))

    # BlockSpecs: x/out tiled over batch at their natural widths (last dim ==
    # full array dim -> legal); weights/biases full-extent (VMEM-resident).
    in_specs = [pl.BlockSpec((tile_b, in_dim), lambda i: (i, 0))]
    args = [x_in]
    for w, b in zip(weights, biases):
        in_specs.append(pl.BlockSpec(w.shape, lambda i: (0, 0)))
        in_specs.append(pl.BlockSpec(b.shape, lambda i: (0, 0)))
        args.append(w)
        args.append(b)
    out_spec = pl.BlockSpec((tile_b, out_dim), lambda i: (i, 0))

    kernel = functools.partial(_mlp_kernel, n_layers)

    out_p = pl.pallas_call(
        kernel,
        out_shape=jax.ShapeDtypeStruct((batch_p, out_dim), x.dtype),
        grid=grid,
        in_specs=in_specs,
        out_specs=out_spec,
        compiler_params=pltpu.CompilerParams(
            # batch axis is embarrassingly parallel -> lets v7x use both TCs
            # when the grid has >= 2 steps; harmless on v5e/v6e.
            dimension_semantics=("parallel",),
        ),
    )(*args)

    return out_p[:batch] if batch_p != batch else out_p


def init_params(layer, key):
    """Deterministic init matching nn.Linear's default U(-1/sqrt(fan_in), ...).

    Weights are stored as (in, out) = PyTorch weight transposed; biases are
    pre-packed once as (1, out) so the forward pass launches no packing ops.
    """
    weights, biases = [], []
    for i in range(len(layer) - 1):
        key, kw, kb = jax.random.split(key, 3)
        fan_in = layer[i]
        bound = 1.0 / jnp.sqrt(jnp.float32(fan_in))
        w = jax.random.uniform(kw, (layer[i], layer[i + 1]), jnp.float32,
                               minval=-bound, maxval=bound)
        b = jax.random.uniform(kb, (1, layer[i + 1]), jnp.float32,
                               minval=-bound, maxval=bound)
        weights.append(w)
        biases.append(b)
    return weights, biases


def mlp_reference(x, weights, biases):
    """Pure-JAX reference for correctness check."""
    h = x
    n = len(weights)
    for i, (w, b) in enumerate(zip(weights, biases)):
        h = h @ w + b[0]
        if i != n - 1:
            h = jnp.tanh(h)
    return h


if __name__ == "__main__":
    # Net(layer=[8, 32, 32, 4]): Linear(8,32) Tanh Linear(32,32) Tanh Linear(32,4)
    layer = [8, 32, 32, 4]

    key = jax.random.PRNGKey(0)
    key, kx, kx2, kx3 = jax.random.split(key, 4)
    weights, biases = init_params(layer, key)

    # --- small batch (matches original usage): single grid step, exact vs ref
    batch = 16
    x = jax.random.normal(kx, (batch, layer[0]), jnp.float32)
    out = jax.block_until_ready(mlp_forward(x, weights, biases))
    ref = mlp_reference(x, weights, biases)
    assert out.shape == (batch, layer[-1])
    assert jnp.allclose(out, ref, atol=1e-5, rtol=1e-5), "small-batch mismatch"

    # --- larger batch: tile_b=512 -> grid of 2 even steps (v7x dual-TC friendly)
    big_batch = 1000
    xb = jax.random.normal(kx2, (big_batch, layer[0]), jnp.float32)
    out_b = jax.block_until_ready(mlp_forward(xb, weights, biases, tile_b=512))
    ref_b = mlp_reference(xb, weights, biases)
    assert out_b.shape == (big_batch, layer[-1])
    assert jnp.allclose(out_b, ref_b, atol=1e-5, rtol=1e-5), "big-batch mismatch"

    # --- batch not a multiple of 8: exercises the sublane pad + masked last tile
    odd_batch = 13
    xo = jax.random.normal(kx3, (odd_batch, layer[0]), jnp.float32)
    out_o = jax.block_until_ready(mlp_forward(xo, weights, biases))
    ref_o = mlp_reference(xo, weights, biases)
    assert out_o.shape == (odd_batch, layer[-1])
    assert jnp.allclose(out_o, ref_o, atol=1e-5, rtol=1e-5), "odd-batch mismatch"

    print("KERNEL_OK")
</pallas_src>

<mosaic_0001>
module attributes {stable_mosaic.version = 11 : i64} {
  func.func @_mlp_kernel(%arg0: i32, %arg1: memref<16x8xf32, #tpu.memory_space<vmem>>, %arg2: memref<8x32xf32, #tpu.memory_space<vmem>>, %arg3: memref<1x32xf32, #tpu.memory_space<vmem>>, %arg4: memref<32x32xf32, #tpu.memory_space<vmem>>, %arg5: memref<1x32xf32, #tpu.memory_space<vmem>>, %arg6: memref<32x4xf32, #tpu.memory_space<vmem>>, %arg7: memref<1x4xf32, #tpu.memory_space<vmem>>, %arg8: memref<16x4xf32, #tpu.memory_space<vmem>>) attributes {dimension_semantics = [#tpu.dimension_semantics<parallel>], iteration_bounds = array<i64: 1>, scalar_prefetch = 0 : i64, scratch_operands = 0 : i64, tpu.core_type = #tpu.core_type<tc>, window_params = [{transform_indices = @transform_0, window_bounds = array<i64: 16, 8>}, {pipeline_mode = #tpu.pipeline_mode<synchronous>, transform_indices = @transform_1, window_bounds = array<i64: 8, 32>}, {pipeline_mode = #tpu.pipeline_mode<synchronous>, transform_indices = @transform_2, window_bounds = array<i64: 1, 32>}, {pipeline_mode = #tpu.pipeline_mode<synchronous>, transform_indices = @transform_3, window_bounds = array<i64: 32, 32>}, {pipeline_mode = #tpu.pipeline_mode<synchronous>, transform_indices = @transform_4, window_bounds = array<i64: 1, 32>}, {pipeline_mode = #tpu.pipeline_mode<synchronous>, transform_indices = @transform_5, window_bounds = array<i64: 32, 4>}, {pipeline_mode = #tpu.pipeline_mode<synchronous>, transform_indices = @transform_6, window_bounds = array<i64: 1, 4>}, {transform_indices = @transform_7, window_bounds = array<i64: 16, 4>}]} {
    %c0 = arith.constant 0 : index
    %c0_0 = arith.constant 0 : index
    %0 = vector.load %arg1[%c0, %c0_0] : memref<16x8xf32, #tpu.memory_space<vmem>>, vector<16x8xf32>
    %c0_1 = arith.constant 0 : index
    %c0_2 = arith.constant 0 : index
    %1 = vector.load %arg2[%c0_1, %c0_2] : memref<8x32xf32, #tpu.memory_space<vmem>>, vector<8x32xf32>
    %c0_3 = arith.constant 0 : index
    %c0_4 = arith.constant 0 : index
    %2 = vector.load %arg3[%c0_3, %c0_4] : memref<1x32xf32, #tpu.memory_space<vmem>>, vector<1x32xf32>
    %cst = arith.constant dense<0.000000e+00> : vector<16x32xf32>
    %3 = tpu.matmul %0, %1, %cst {dimension_numbers = #tpu.dot_dimension_numbers<[1], [0], [0], [1], [0, 0, 1, 1], [], []>} : vector<16x8xf32>, vector<8x32xf32>, vector<16x32xf32> -> vector<16x32xf32>
    %4 = vector.broadcast %2 : vector<1x32xf32> to vector<16x32xf32>
    %5 = arith.addf %3, %4 : vector<16x32xf32>
    %6 = math.tanh %5 : vector<16x32xf32>
    %c0_5 = arith.constant 0 : index
    %c0_6 = arith.constant 0 : index
    %7 = vector.load %arg4[%c0_5, %c0_6] : memref<32x32xf32, #tpu.memory_space<vmem>>, vector<32x32xf32>
    %c0_7 = arith.constant 0 : index
    %c0_8 = arith.constant 0 : index
    %8 = vector.load %arg5[%c0_7, %c0_8] : memref<1x32xf32, #tpu.memory_space<vmem>>, vector<1x32xf32>
    %cst_9 = arith.constant dense<0.000000e+00> : vector<16x32xf32>
    %9 = tpu.matmul %6, %7, %cst_9 {dimension_numbers = #tpu.dot_dimension_numbers<[1], [0], [0], [1], [0, 0, 1, 1], [], []>} : vector<16x32xf32>, vector<32x32xf32>, vector<16x32xf32> -> vector<16x32xf32>
    %10 = vector.broadcast %8 : vector<1x32xf32> to vector<16x32xf32>
    %11 = arith.addf %9, %10 : vector<16x32xf32>
    %12 = math.tanh %11 : vector<16x32xf32>
    %c0_10 = arith.constant 0 : index
    %c0_11 = arith.constant 0 : index
    %13 = vector.load %arg6[%c0_10, %c0_11] : memref<32x4xf32, #tpu.memory_space<vmem>>, vector<32x4xf32>
    %c0_12 = arith.constant 0 : index
    %c0_13 = arith.constant 0 : index
    %14 = vector.load %arg7[%c0_12, %c0_13] : memref<1x4xf32, #tpu.memory_space<vmem>>, vector<1x4xf32>
    %cst_14 = arith.constant dense<0.000000e+00> : vector<16x4xf32>
    %15 = tpu.matmul %12, %13, %cst_14 {dimension_numbers = #tpu.dot_dimension_numbers<[1], [0], [0], [1], [0, 0, 1, 1], [], []>} : vector<16x32xf32>, vector<32x4xf32>, vector<16x4xf32> -> vector<16x4xf32>
    %16 = vector.broadcast %14 : vector<1x4xf32> to vector<16x4xf32>
    %17 = arith.addf %15, %16 : vector<16x4xf32>
    %c0_15 = arith.constant 0 : index
    %c0_16 = arith.constant 0 : index
    %18 = vector.load %arg8[%c0_15, %c0_16] : memref<16x4xf32, #tpu.memory_space<vmem>>, vector<16x4xf32>
    tpu.vector_store %arg8[%c0_15, %c0_16], %17 {strides = array<i32>} : memref<16x4xf32, #tpu.memory_space<vmem>>, vector<16x4xf32>,
    return
  }
  func.func @transform_0(%arg0: i32) -> (i32, i32) {
    %c0_i32 = arith.constant 0 : i32
    %c0_i32_0 = arith.constant 0 : i32
    return %arg0, %c0_i32 : i32, i32
  }
  func.func @transform_1(%arg0: i32) -> (i32, i32) {
    %c0_i32 = arith.constant 0 : i32
    %c0_i32_0 = arith.constant 0 : i32
    %c0_i32_1 = arith.constant 0 : i32
    return %c0_i32, %c0_i32_0 : i32, i32
  }
  func.func @transform_2(%arg0: i32) -> (i32, i32) {
    %c0_i32 = arith.constant 0 : i32
    %c0_i32_0 = arith.constant 0 : i32
    %c0_i32_1 = arith.constant 0 : i32
    return %c0_i32, %c0_i32_0 : i32, i32
  }
  func.func @transform_3(%arg0: i32) -> (i32, i32) {
    %c0_i32 = arith.constant 0 : i32
    %c0_i32_0 = arith.constant 0 : i32
    %c0_i32_1 = arith.constant 0 : i32
    return %c0_i32, %c0_i32_0 : i32, i32
  }
  func.func @transform_4(%arg0: i32) -> (i32, i32) {
    %c0_i32 = arith.constant 0 : i32
    %c0_i32_0 = arith.constant 0 : i32
    %c0_i32_1 = arith.constant 0 : i32
    return %c0_i32, %c0_i32_0 : i32, i32
  }
  func.func @transform_5(%arg0: i32) -> (i32, i32) {
    %c0_i32 = arith.constant 0 : i32
    %c0_i32_0 = arith.constant 0 : i32
    %c0_i32_1 = arith.constant 0 : i32
    return %c0_i32, %c0_i32_0 : i32, i32
  }
  func.func @transform_6(%arg0: i32) -> (i32, i32) {
    %c0_i32 = arith.constant 0 : i32
    %c0_i32_0 = arith.constant 0 : i32
    %c0_i32_1 = arith.constant 0 : i32
    return %c0_i32, %c0_i32_0 : i32, i32
  }
  func.func @transform_7(%arg0: i32) -> (i32, i32) {
    %c0_i32 = arith.constant 0 : i32
    %c0_i32_0 = arith.constant 0 : i32
    return %arg0, %c0_i32 : i32, i32
  }
}

</mosaic_0001>

<bundles_post_ra>
// kernel: tpu_custom_call.1
= control target key start
LH: loop header
LB: loop body
LE: loop exit
PB: predicated region body
PF: predicated region fallthrough
CT: control target
= control target key end

     0   :  { %vm33_vm0 = vcmask 64512   ;;  %vm73_vm1 = vcmask 261120   ;;  %vm142_vm2 = vcmask 31744   ;;  %s262_s1 = inlined_call_operand.vmem [shape: f32[8,32], index: 1, kind: input, shape index: {}]   ;;  %s263_s0 = inlined_call_operand.vmem [shape: f32[16,8], index: 0, kind: input, shape index: {}]   ;;  %s264_s2 = inlined_call_operand.vmem [shape: f32[1,32], index: 2, kind: input, shape index: {}]   ;;  %s265_s4 = inlined_call_operand.vmem [shape: f32[1,32], index: 4, kind: input, shape index: {}]   ;;  %s266_s3 = inlined_call_operand.vmem [shape: f32[32,32], index: 3, kind: input, shape index: {}]   ;;  %s267_s6 = inlined_call_operand.vmem [shape: f32[1,4], index: 6, kind: input, shape index: {}]   ;;  %s268_s5 = inlined_call_operand.vmem [shape: f32[32,4], index: 5, kind: input, shape index: {}]   ;;  %s269_s7 = inlined_call_operand.vmem [shape: f32[16,4], index: 7, kind: output, shape index: {}]  }
   0x1   :  { %v28_v0 = vld [vmem:[%s262_s1] sm:$0xff]  ;;  %v27_v2 = vld [vmem:[%s263_s0 + $0x8] sm:$0xff]  ;;  %v68_v3 = vld [vmem:[%s266_s3 + $0x18] sm:$0xff] }
   0x2   :  { %v26_v1 = vld [vmem:[%s263_s0] sm:$0xff]  ;;  %55 = vmatpush.msra.mxu0 %v28_v0  ;;  %92 = vmatpush.msra.mxu1 %v68_v3  ;;  %v67_v4 = vld [vmem:[%s266_s3 + $0x10] sm:$0xff]  ;;  %v66_v5 = vld [vmem:[%s266_s3 + $0x8] sm:$0xff] }
   0x3   :  { %149 = vmatmul.msk.f32.vlgmr.msra.gmra.mxu0 %vm33_vm0, %v26_v1  ;;  %155 = vmatpush.msra.mxu3 %v68_v3  ;;  %v65_v6 = vld [vmem:[%s266_s3] sm:$0xff]  ;;  %v108_v14 = vld [vmem:[%s268_s5 + $0x18] sm:$0xff]  ;;  %v107_v15 = vld [vmem:[%s268_s5 + $0x10] sm:$0xff] }
   0x4   :  { %93 = vmatpush.msra.mxu1 %v67_v4  ;;  %v159_v7 = vld [vmem:[%s264_s2] ss:$0 sm:$0xff]  ;;  %131 = vmatpush.msra.mxu2 %v108_v14  ;;  %v106_v16 = vld [vmem:[%s268_s5 + $0x8] sm:$0xff] }
   0x5   :  { %156 = vmatpush.msra.mxu3 %v67_v4  ;;  %v105_v17 = vld [vmem:[%s268_s5] sm:$0xff] }
   0x6   :  { %94 = vmatpush.msra.mxu1 %v66_v5  ;;  %132 = vmatpush.msra.mxu2 %v107_v15  ;;  %v160_v18 = vld [vmem:[%s265_s4] ss:$0 sm:$0xff] }
   0x7   :  { %157 = vmatpush.msra.mxu3 %v66_v5  ;;  %v161_v25 = vld [vmem:[%s267_s6] ss:$0 sm:$0xff] }
   0x8   :  { %95 = vmatpush.msra.mxu1 %v65_v6  ;;  %133 = vmatpush.msra.mxu2 %v106_v16 }
   0x9   :  { %158 = vmatpush.msra.mxu3 %v65_v6 }
   0xa   :  { %134 = vmatpush.msra.mxu2 %v105_v17 }
   0xb   :  { %150 = vmatmul.msk.f32.gmra.mxu0 %vm33_vm0, %v27_v2 }
  0x80   :  { %v57_v8 = vpop.f32.mrf.mxu0 }
  0x81   :  { %v58_v9 = vadd.f32 %v159_v7, %v57_v8 }
  0x83   :  { %162 = vtanh.f32 %v58_v9 }
  0x88   :  { %v60_v10 = vpop.f32.mrf.mxu0 }
  0x89   :  { %v163_v11 = vpop.eup %162  ;;  %v61_v12 = vadd.f32 %v159_v7, %v60_v10 }
  0x8a   :  { %151 = vmatmul.msk.f32.vlgmr.msra.gmra.mxu1 %vm73_vm1, %v163_v11 }
  0x8b   :  { %164 = vtanh.f32 %v61_v12 }
  0x91   :  { %v165_v13 = vpop.eup %164 }
  0x92   :  { %152 = vmatmul.msk.f32.vlgmr.msra.gmra.mxu3 %vm73_vm1, %v165_v13 }
 0x107   :  { %v97_v19 = vpop.f32.mrf.mxu1 }
 0x108   :  { %v98_v20 = vadd.f32 %v160_v18, %v97_v19 }
 0x10a   :  { %166 = vtanh.f32 %v98_v20 }
 0x110   :  { %v167_v21 = vpop.eup %166 }
 0x111   :  { %153 = vmatmul.msk.f32.vlgmr.msra.gmra.mxu2 %vm73_vm1, %v167_v21 }
 0x115   :  { %v100_v22 = vpop.f32.mrf.mxu3 }
 0x116   :  { %v101_v23 = vadd.f32 %v160_v18, %v100_v22 }
 0x118   :  { %168 = vtanh.f32 %v101_v23 }
 0x11e   :  { %v169_v24 = vpop.eup %168 }
 0x11f   :  { %154 = vmatmul.msk.f32.gmra.mxu2 %vm73_vm1, %v169_v24 }
 0x194   :  { %v136_v26 = vpop.f32.mrf.mxu2 }
 0x195   :  { %v137_v27 = vadd.f32 %v161_v25, %v136_v26 }
 0x197   :  { %143 = vst.msk [vmem:[%s269_s7] sm:$0xff] %vm142_vm2, %v137_v27 }
 0x1a2   :  { %v139_v28 = vpop.f32.mrf.mxu2 }
 0x1a3   :  { %v140_v29 = vadd.f32 %v161_v25, %v139_v28 }
 0x1a5   :  { %144 = vst.msk [vmem:[%s269_s7 + $0x8] sm:$0xff] %vm142_vm2, %v140_v29 }

</bundles_post_ra>
